<compile_context>
chip_gen: v7x
topology: tpu7x:2x2x1
jax: 0.10.0
libtpu: 0.0.40
codegen_flags: <defaults>
</compile_context>

<pallas_src>
import functools

import jax
import jax.numpy as jnp
from jax.experimental import pallas as pl
from jax.experimental.pallas import tpu as pltpu


# ----------------------------------------------------------------------------
# Fused kernel: cropped-1x1 + valid-3x3, concatenated along channels.
# ----------------------------------------------------------------------------
def _fused_concat_kernel(x_ref, w_ref, b_ref, o_ref, *, tap_offsets):
    # x_ref: (1, C_in, L)      activations, spatial flattened (L = H*W)
    # w_ref: (T, C_tot, C_in)  tap-major combined weights (T = 9 taps)
    # b_ref: (C_tot, 1)        combined bias
    # o_ref: (1, C_tot, L)     concatenated output, still at full H*W lanes
    x = x_ref[0]                               # (C_in, L), VMEM resident
    L = x.shape[-1]
    lane_axis = x.ndim - 1                     # pltpu.roll needs a >=0 axis
    c_tot = o_ref.shape[1]

    acc = jnp.zeros((c_tot, L), jnp.float32)
    for t, off in enumerate(tap_offsets):      # statically unrolled, 9 taps
        # Want xt[:, p] == x[:, p + off]; wrap-around only lands in positions
        # the wrapper crops away.  jnp.roll semantics: y[p] = x[(p - s) % L],
        # so s = L - off gives y[p] = x[(p + off) % L].
        xt = x if off == 0 else pltpu.roll(x, shift=L - off, axis=lane_axis)
        acc += jnp.dot(w_ref[t], xt, preferred_element_type=jnp.float32)

    o_ref[0] = (acc + b_ref[...]).astype(o_ref.dtype)


# ----------------------------------------------------------------------------
# Wrapper: builds combined weights, launches one pallas_call, crops.
# ----------------------------------------------------------------------------
@functools.partial(jax.jit, static_argnames=("compute_dtype",))
def concat_forward(x, w1, b1, w2, b2, *, compute_dtype=None):
    # x: (N, C_in, H, W); w1: (C1, C_in); w2: (C2, C_in, 3, 3)
    N, C_in, H, W = x.shape
    C1, C2 = w1.shape[0], w2.shape[0]
    C_tot = C1 + C2
    Ho, Wo = H - 2, W - 2                      # min spatial over the branches
    L = H * W

    dt = compute_dtype or x.dtype              # bf16 here = MXU lever (v6e/v7x)

    # Tap-major combined weights (9, C_tot, C_in); tap index t = 3*ky + kx.
    # Branch-0 (1x1) rows contribute only at the center tap (ky=kx=1), because
    # crop(conv1x1(x)) == conv1x1(center-crop(x)).
    w2t = jnp.transpose(w2, (2, 3, 0, 1)).reshape(9, C2, C_in)
    w1t = jnp.zeros((9, C1, C_in), w1.dtype).at[4].set(w1)
    w_comb = jnp.concatenate([w1t, w2t], axis=1).astype(dt)
    bias = jnp.concatenate([b1, b2]).reshape(C_tot, 1).astype(jnp.float32)

    x_flat = x.reshape(N, C_in, L).astype(dt)  # contiguous reshape, no copy
    tap_offsets = tuple(ky * W + kx for ky in range(3) for kx in range(3))

    kernel = functools.partial(_fused_concat_kernel, tap_offsets=tap_offsets)
    out_flat = pl.pallas_call(
        kernel,
        out_shape=jax.ShapeDtypeStruct((N, C_tot, L), x.dtype),
        grid_spec=pltpu.PrefetchScalarGridSpec(
            num_scalar_prefetch=0,
            grid=(N,),
            in_specs=[
                pl.BlockSpec((1, C_in, L), lambda n: (n, 0, 0)),
                pl.BlockSpec((9, C_tot, C_in), lambda n: (0, 0, 0)),
                pl.BlockSpec((C_tot, 1), lambda n: (0, 0)),
            ],
            out_specs=pl.BlockSpec((1, C_tot, L), lambda n: (n, 0, 0)),
        ),
        compiler_params=pltpu.CompilerParams(
            dimension_semantics=("parallel",)),   # batch axis -> v7x 2-TC split
    )(x_flat, w_comb, bias)

    # Valid results live at flat positions i*W + j with i < Ho, j < Wo; the
    # remaining lanes hold wrap-around garbage and are dropped here (tiny
    # XLA slice on an already-small output).
    # TODO(synk): for large H*W / channels, add a lane-tile grid axis
    # (multiple of 128, roughly halved on v7x's 64 MiB VMEM) instead of one
    # full-H*W block per batch element.
    return out_flat.reshape(N, C_tot, H, W)[:, :, :Ho, :Wo]


if __name__ == "__main__":
    key = jax.random.PRNGKey(0)
    k1, k2, k3, k4, k5 = jax.random.split(key, 5)

    N, C_in, H, W = 2, 4, 16, 16
    C1, C2 = 8, 8

    x = jax.random.normal(k1, (N, C_in, H, W), jnp.float32)
    w1 = 0.1 * jax.random.normal(k2, (C1, C_in), jnp.float32)
    b1 = 0.1 * jax.random.normal(k3, (C1,), jnp.float32)
    w2 = 0.1 * jax.random.normal(k4, (C2, C_in, 3, 3), jnp.float32)
    b2 = 0.1 * jax.random.normal(k5, (C2,), jnp.float32)

    out = jax.block_until_ready(concat_forward(x, w1, b1, w2, b2))

    # Pure-JAX reference with the exact Concat.forward crop rule.
    y0 = jnp.einsum("oc,nchw->nohw", w1, x) + b1[None, :, None, None]
    y1 = jax.lax.conv_general_dilated(
        x, w2, window_strides=(1, 1), padding="VALID",
        dimension_numbers=("NCHW", "OIHW", "NCHW"),
    ) + b2[None, :, None, None]
    Ho, Wo = y1.shape[2], y1.shape[3]
    dh, dw = (y0.shape[2] - Ho) // 2, (y0.shape[3] - Wo) // 2
    ref = jnp.concatenate([y0[:, :, dh:dh + Ho, dw:dw + Wo], y1], axis=1)

    assert out.shape == ref.shape, (out.shape, ref.shape)
    max_err = float(jnp.abs(out - ref).max())
    assert jnp.allclose(out, ref, atol=1e-4, rtol=1e-4), max_err
    print("KERNEL_OK")
</pallas_src>

<mosaic_0001>
module attributes {stable_mosaic.version = 11 : i64} {
  func.func @_fused_concat_kernel(%arg0: i32, %arg1: memref<1x4x256xf32, #tpu.memory_space<vmem>>, %arg2: memref<9x16x4xf32, #tpu.memory_space<vmem>>, %arg3: memref<16x1xf32, #tpu.memory_space<vmem>>, %arg4: memref<1x16x256xf32, #tpu.memory_space<vmem>>) attributes {dimension_semantics = [#tpu.dimension_semantics<parallel>], iteration_bounds = array<i64: 2>, scalar_prefetch = 0 : i64, scratch_operands = 0 : i64, tpu.core_type = #tpu.core_type<tc>, window_params = [{transform_indices = @transform_0, window_bounds = array<i64: 1, 4, 256>}, {pipeline_mode = #tpu.pipeline_mode<synchronous>, transform_indices = @transform_1, window_bounds = array<i64: 9, 16, 4>}, {pipeline_mode = #tpu.pipeline_mode<synchronous>, transform_indices = @transform_2, window_bounds = array<i64: 16, 1>}, {transform_indices = @transform_3, window_bounds = array<i64: 1, 16, 256>}]} {
    %c0 = arith.constant 0 : index
    %c0_0 = arith.constant 0 : index
    %c0_1 = arith.constant 0 : index
    %0 = vector.load %arg1[%c0, %c0_0, %c0_1] : memref<1x4x256xf32, #tpu.memory_space<vmem>>, vector<1x4x256xf32>
    %1 = vector.shape_cast %0 : vector<1x4x256xf32> to vector<4x256xf32>
    %cst = arith.constant 0.000000e+00 : f32
    %2 = vector.broadcast %cst : f32 to vector<16x256xf32>
    %c0_2 = arith.constant 0 : index
    %c0_3 = arith.constant 0 : index
    %c0_4 = arith.constant 0 : index
    %3 = vector.load %arg2[%c0_2, %c0_3, %c0_4] : memref<9x16x4xf32, #tpu.memory_space<vmem>>, vector<1x16x4xf32>
    %4 = vector.shape_cast %3 : vector<1x16x4xf32> to vector<16x4xf32>
    %cst_5 = arith.constant dense<0.000000e+00> : vector<16x256xf32>
    %5 = tpu.matmul %4, %1, %cst_5 {dimension_numbers = #tpu.dot_dimension_numbers<[1], [0], [0], [1], [0, 0, 1, 1], [], []>} : vector<16x4xf32>, vector<4x256xf32>, vector<16x256xf32> -> vector<16x256xf32>
    %6 = arith.addf %2, %5 : vector<16x256xf32>
    %c255_i32 = arith.constant 255 : i32
    %7 = tpu.dynamic_rotate %1 by %c255_i32 dim 1 : vector<4x256xf32>, i32 -> vector<4x256xf32>
    %c1 = arith.constant 1 : index
    %c0_6 = arith.constant 0 : index
    %c0_7 = arith.constant 0 : index
    %8 = vector.load %arg2[%c1, %c0_6, %c0_7] : memref<9x16x4xf32, #tpu.memory_space<vmem>>, vector<1x16x4xf32>
    %9 = vector.shape_cast %8 : vector<1x16x4xf32> to vector<16x4xf32>
    %cst_8 = arith.constant dense<0.000000e+00> : vector<16x256xf32>
    %10 = tpu.matmul %9, %7, %cst_8 {dimension_numbers = #tpu.dot_dimension_numbers<[1], [0], [0], [1], [0, 0, 1, 1], [], []>} : vector<16x4xf32>, vector<4x256xf32>, vector<16x256xf32> -> vector<16x256xf32>
    %11 = arith.addf %6, %10 : vector<16x256xf32>
    %c254_i32 = arith.constant 254 : i32
    %12 = tpu.dynamic_rotate %1 by %c254_i32 dim 1 : vector<4x256xf32>, i32 -> vector<4x256xf32>
    %c2 = arith.constant 2 : index
    %c0_9 = arith.constant 0 : index
    %c0_10 = arith.constant 0 : index
    %13 = vector.load %arg2[%c2, %c0_9, %c0_10] : memref<9x16x4xf32, #tpu.memory_space<vmem>>, vector<1x16x4xf32>
    %14 = vector.shape_cast %13 : vector<1x16x4xf32> to vector<16x4xf32>
    %cst_11 = arith.constant dense<0.000000e+00> : vector<16x256xf32>
    %15 = tpu.matmul %14, %12, %cst_11 {dimension_numbers = #tpu.dot_dimension_numbers<[1], [0], [0], [1], [0, 0, 1, 1], [], []>} : vector<16x4xf32>, vector<4x256xf32>, vector<16x256xf32> -> vector<16x256xf32>
    %16 = arith.addf %11, %15 : vector<16x256xf32>
    %c240_i32 = arith.constant 240 : i32
    %17 = tpu.dynamic_rotate %1 by %c240_i32 dim 1 : vector<4x256xf32>, i32 -> vector<4x256xf32>
    %c3 = arith.constant 3 : index
    %c0_12 = arith.constant 0 : index
    %c0_13 = arith.constant 0 : index
    %18 = vector.load %arg2[%c3, %c0_12, %c0_13] : memref<9x16x4xf32, #tpu.memory_space<vmem>>, vector<1x16x4xf32>
    %19 = vector.shape_cast %18 : vector<1x16x4xf32> to vector<16x4xf32>
    %cst_14 = arith.constant dense<0.000000e+00> : vector<16x256xf32>
    %20 = tpu.matmul %19, %17, %cst_14 {dimension_numbers = #tpu.dot_dimension_numbers<[1], [0], [0], [1], [0, 0, 1, 1], [], []>} : vector<16x4xf32>, vector<4x256xf32>, vector<16x256xf32> -> vector<16x256xf32>
    %21 = arith.addf %16, %20 : vector<16x256xf32>
    %c239_i32 = arith.constant 239 : i32
    %22 = tpu.dynamic_rotate %1 by %c239_i32 dim 1 : vector<4x256xf32>, i32 -> vector<4x256xf32>
    %c4 = arith.constant 4 : index
    %c0_15 = arith.constant 0 : index
    %c0_16 = arith.constant 0 : index
    %23 = vector.load %arg2[%c4, %c0_15, %c0_16] : memref<9x16x4xf32, #tpu.memory_space<vmem>>, vector<1x16x4xf32>
    %24 = vector.shape_cast %23 : vector<1x16x4xf32> to vector<16x4xf32>
    %cst_17 = arith.constant dense<0.000000e+00> : vector<16x256xf32>
    %25 = tpu.matmul %24, %22, %cst_17 {dimension_numbers = #tpu.dot_dimension_numbers<[1], [0], [0], [1], [0, 0, 1, 1], [], []>} : vector<16x4xf32>, vector<4x256xf32>, vector<16x256xf32> -> vector<16x256xf32>
    %26 = arith.addf %21, %25 : vector<16x256xf32>
    %c238_i32 = arith.constant 238 : i32
    %27 = tpu.dynamic_rotate %1 by %c238_i32 dim 1 : vector<4x256xf32>, i32 -> vector<4x256xf32>
    %c5 = arith.constant 5 : index
    %c0_18 = arith.constant 0 : index
    %c0_19 = arith.constant 0 : index
    %28 = vector.load %arg2[%c5, %c0_18, %c0_19] : memref<9x16x4xf32, #tpu.memory_space<vmem>>, vector<1x16x4xf32>
    %29 = vector.shape_cast %28 : vector<1x16x4xf32> to vector<16x4xf32>
    %cst_20 = arith.constant dense<0.000000e+00> : vector<16x256xf32>
    %30 = tpu.matmul %29, %27, %cst_20 {dimension_numbers = #tpu.dot_dimension_numbers<[1], [0], [0], [1], [0, 0, 1, 1], [], []>} : vector<16x4xf32>, vector<4x256xf32>, vector<16x256xf32> -> vector<16x256xf32>
    %31 = arith.addf %26, %30 : vector<16x256xf32>
    %c224_i32 = arith.constant 224 : i32
    %32 = tpu.dynamic_rotate %1 by %c224_i32 dim 1 : vector<4x256xf32>, i32 -> vector<4x256xf32>
    %c6 = arith.constant 6 : index
    %c0_21 = arith.constant 0 : index
    %c0_22 = arith.constant 0 : index
    %33 = vector.load %arg2[%c6, %c0_21, %c0_22] : memref<9x16x4xf32, #tpu.memory_space<vmem>>, vector<1x16x4xf32>
    %34 = vector.shape_cast %33 : vector<1x16x4xf32> to vector<16x4xf32>
    %cst_23 = arith.constant dense<0.000000e+00> : vector<16x256xf32>
    %35 = tpu.matmul %34, %32, %cst_23 {dimension_numbers = #tpu.dot_dimension_numbers<[1], [0], [0], [1], [0, 0, 1, 1], [], []>} : vector<16x4xf32>, vector<4x256xf32>, vector<16x256xf32> -> vector<16x256xf32>
    %36 = arith.addf %31, %35 : vector<16x256xf32>
    %c223_i32 = arith.constant 223 : i32
    %37 = tpu.dynamic_rotate %1 by %c223_i32 dim 1 : vector<4x256xf32>, i32 -> vector<4x256xf32>
    %c7 = arith.constant 7 : index
    %c0_24 = arith.constant 0 : index
    %c0_25 = arith.constant 0 : index
    %38 = vector.load %arg2[%c7, %c0_24, %c0_25] : memref<9x16x4xf32, #tpu.memory_space<vmem>>, vector<1x16x4xf32>
    %39 = vector.shape_cast %38 : vector<1x16x4xf32> to vector<16x4xf32>
    %cst_26 = arith.constant dense<0.000000e+00> : vector<16x256xf32>
    %40 = tpu.matmul %39, %37, %cst_26 {dimension_numbers = #tpu.dot_dimension_numbers<[1], [0], [0], [1], [0, 0, 1, 1], [], []>} : vector<16x4xf32>, vector<4x256xf32>, vector<16x256xf32> -> vector<16x256xf32>
    %41 = arith.addf %36, %40 : vector<16x256xf32>
    %c222_i32 = arith.constant 222 : i32
    %42 = tpu.dynamic_rotate %1 by %c222_i32 dim 1 : vector<4x256xf32>, i32 -> vector<4x256xf32>
    %c8 = arith.constant 8 : index
    %c0_27 = arith.constant 0 : index
    %c0_28 = arith.constant 0 : index
    %43 = vector.load %arg2[%c8, %c0_27, %c0_28] : memref<9x16x4xf32, #tpu.memory_space<vmem>>, vector<1x16x4xf32>
    %44 = vector.shape_cast %43 : vector<1x16x4xf32> to vector<16x4xf32>
    %cst_29 = arith.constant dense<0.000000e+00> : vector<16x256xf32>
    %45 = tpu.matmul %44, %42, %cst_29 {dimension_numbers = #tpu.dot_dimension_numbers<[1], [0], [0], [1], [0, 0, 1, 1], [], []>} : vector<16x4xf32>, vector<4x256xf32>, vector<16x256xf32> -> vector<16x256xf32>
    %46 = arith.addf %41, %45 : vector<16x256xf32>
    %c0_30 = arith.constant 0 : index
    %c0_31 = arith.constant 0 : index
    %47 = vector.load %arg3[%c0_30, %c0_31] : memref<16x1xf32, #tpu.memory_space<vmem>>, vector<16x1xf32>
    %48 = vector.broadcast %47 : vector<16x1xf32> to vector<16x256xf32>
    %49 = arith.addf %46, %48 : vector<16x256xf32>
    %c0_32 = arith.constant 0 : index
    %c0_33 = arith.constant 0 : index
    %c0_34 = arith.constant 0 : index
    %50 = vector.load %arg4[%c0_32, %c0_33, %c0_34] : memref<1x16x256xf32, #tpu.memory_space<vmem>>, vector<1x16x256xf32>
    %51 = vector.shape_cast %50 : vector<1x16x256xf32> to vector<16x256xf32>
    %52 = vector.shape_cast %49 : vector<16x256xf32> to vector<1x16x256xf32>
    tpu.vector_store %arg4[%c0_32, %c0_33, %c0_34], %52 {strides = array<i32>} : memref<1x16x256xf32, #tpu.memory_space<vmem>>, vector<1x16x256xf32>,
    return
  }
  func.func @transform_0(%arg0: i32) -> (i32, i32, i32) {
    %c0_i32 = arith.constant 0 : i32
    %c0_i32_0 = arith.constant 0 : i32
    %c0_i32_1 = arith.constant 0 : i32
    return %arg0, %c0_i32, %c0_i32_0 : i32, i32, i32
  }
  func.func @transform_1(%arg0: i32) -> (i32, i32, i32) {
    %c0_i32 = arith.constant 0 : i32
    %c0_i32_0 = arith.constant 0 : i32
    %c0_i32_1 = arith.constant 0 : i32
    %c0_i32_2 = arith.constant 0 : i32
    return %c0_i32, %c0_i32_0, %c0_i32_1 : i32, i32, i32
  }
  func.func @transform_2(%arg0: i32) -> (i32, i32) {
    %c0_i32 = arith.constant 0 : i32
    %c0_i32_0 = arith.constant 0 : i32
    %c0_i32_1 = arith.constant 0 : i32
    return %c0_i32, %c0_i32_0 : i32, i32
  }
  func.func @transform_3(%arg0: i32) -> (i32, i32, i32) {
    %c0_i32 = arith.constant 0 : i32
    %c0_i32_0 = arith.constant 0 : i32
    %c0_i32_1 = arith.constant 0 : i32
    return %arg0, %c0_i32, %c0_i32_0 : i32, i32, i32
  }
}

</mosaic_0001>

<bundles_post_ra>
// kernel: concat_forward.1
= control target key start
LH: loop header
LB: loop body
LE: loop exit
PB: predicated region body
PF: predicated region fallthrough
CT: control target
= control target key end

     0   :  { %s1321_s12 = smov 0   ;;  %s1489_s0 = inlined_call_operand.vmem [shape: f32[2,4,256], index: 0, kind: input, shape index: {}]   ;;  %s1490_s1 = inlined_call_operand.vmem [shape: f32[9,16,4], index: 1, kind: input, shape index: {}]   ;;  %s1491_s2 = inlined_call_operand.vmem [shape: f32[16,1], index: 2, kind: input, shape index: {}]   ;;  %s1492_s3 = inlined_call_operand.vmem [shape: f32[2,16,256], index: 3, kind: output, shape index: {}]  }
   0x1 LB: > { %s1163_s13 = sadd.s32 4294967295, %s1289_s12   ;;  %p1167_p0 = scmp.ge.s32.totalorder %s1289_s12, 1  ;;  %s1289_s12 = sphi %s1321_s12, %s13_s12  }
   0x2   : > { %p137_p1 = scmp.lt.s32.totalorder %s1289_s12, 3 }
   0x4   : > { %p138_p2 = pnand %p1167_p0, %p137_p1 }
   0x5   : > { %p161_p3 = scmp.lt.s32.totalorder (!%p138_p2), %s1163_s13, 1  ;;  %v1291_v0 = vmov (!%p138_p2), 0.0   ;;  %s1292_s18 = smov (!%p138_p2), 111   ;;  %v1088_v3 = vld [vmem:[%s1491_s2] sm:$0xff] (!%p138_p2)  ;;  %v1089_v4 = vld [vmem:[%s1491_s2 + $0x8] sm:$0xff] (!%p138_p2)  ;;  %v1300_v5 = vmov (!%p138_p2), 0   ;;  %v181_v6 = vlaneseq (!%p138_p2) }
   0x6   : > { %141 = sbr.rel (%p138_p2) target bundleno = 393 (0x189), region = 32  ;;  %267 = vmatprep.mubr.f32.mxu1 (!%p138_p2), %v1291_v0  ;;  %659 = vmatprep.mubr.f32.mxu0 (!%p138_p2), %v1291_v0  ;;  %s1293_s19 = smov (!%p138_p2), 127   ;;  %vm196_vm2 = vcmask (!%p138_p2), 1043456   ;;  %vm189_vm3 = vcmask (!%p138_p2), 31744   ;;  %v1194_v16 = vld [vmem:[%s1490_s1 + $0x40] sm:$0xff] (!%p138_p2)  ;;  %v1172_v17 = vld [vmem:[%s1490_s1 + $0x10] sm:$0xff] (!%p138_p2) }
   0x7   : > { %s1294_s20 = smov (!%p138_p2), 110   ;;  %s1295_s21 = smov (!%p138_p2), 126   ;;  %1280 = vset.pattern.permute.xlu0 (!%p138_p2), %v1300_v5  ;;  %1281 = vset.pattern.permute.xlu1 (!%p138_p2), %v1300_v5  ;;  %v1355_v7 = vand.u32 (!%p138_p2), 127, %v181_v6  ;;  %v1173_v22 = vld [vmem:[%s1490_s1 + $0x18] sm:$0xff] (!%p138_p2)  ;;  %v172_v26 = vld [vmem:[%s1490_s1] sm:$0xff] (!%p138_p2)  ;;  %v1200_v27 = vld [vmem:[%s1490_s1 + $0x50] sm:$0xff] (!%p138_p2) }
   0x8   : > { %s1296_s22 = smov (!%p138_p2), 96   ;;  %s1297_s23 = smov (!%p138_p2), 112   ;;  %v173_v33 = vld [vmem:[%s1490_s1 + $0x8] sm:$0xff] (!%p138_p2)  ;;  %v1201_v34 = vld [vmem:[%s1490_s1 + $0x58] sm:$0xff] (!%p138_p2)  ;;  %v1182_v38 = vld [vmem:[%s1490_s1 + $0x20] sm:$0xff] (!%p138_p2) }
   0x9   : > { %s1298_s24 = smov (!%p138_p2), 95   ;;  %s1299_s25 = smov (!%p138_p2), 94   ;;  %vm183_vm0 = vcmp.lt.s32.totalorder (!%p138_p2), %v1355_v7, 127  ;;  %vm577_vm1 = vcmp.lt.s32.totalorder (!%p138_p2), %v1355_v7, 111  ;;  %vm680_vm4 = vcmp.lt.s32.totalorder (!%p138_p2), %v1355_v7, 110  ;;  %vm371_vm5 = vcmp.lt.s32.totalorder (!%p138_p2), %v1355_v7, 126 }
   0xa   : > { %vm783_vm6 = vcmp.lt.s32.totalorder (!%p138_p2), %v1355_v7, 96  ;;  %vm474_vm7 = vcmp.lt.s32.totalorder (!%p138_p2), %v1355_v7, 112  ;;  %v1206_v39 = vld [vmem:[%s1490_s1 + $0x60] sm:$0xff] (!%p138_p2)  ;;  %vm886_vm8 = vcmp.lt.s32.totalorder (!%p138_p2), %v1355_v7, 95  ;;  %v1183_v45 = vld [vmem:[%s1490_s1 + $0x28] sm:$0xff] (!%p138_p2)  ;;  %vm989_vm9 = vcmp.lt.s32.totalorder (!%p138_p2), %v1355_v7, 94 }
   0xb   : > { %v1207_v46 = vld [vmem:[%s1490_s1 + $0x68] sm:$0xff] (!%p138_p2)  ;;  %v1188_v50 = vld [vmem:[%s1490_s1 + $0x30] sm:$0xff] (!%p138_p2)  ;;  %v1189_v53 = vld [vmem:[%s1490_s1 + $0x38] sm:$0xff] (!%p138_p2) }
   0xc   : > { %v1212_v51 = vld [vmem:[%s1490_s1 + $0x70] sm:$0xff] (!%p138_p2)  ;;  %v1213_v54 = vld [vmem:[%s1490_s1 + $0x78] sm:$0xff] (!%p138_p2)  ;;  %v1218_v55 = vld [vmem:[%s1490_s1 + $0x80] sm:$0xff] (!%p138_p2) }
   0xd   : > { %s1494_s13 = smov (!%p161_p3, %s1163_s13), 1  ;;  %v1195_v56 = vld [vmem:[%s1490_s1 + $0x48] sm:$0xff] }
   0xe   : > { %s1226_s14 = sshll.u32 %s1494_s13, 3  ;;  %v1219_v57 = vld [vmem:[%s1490_s1 + $0x88] sm:$0xff]  ;;  %s1227_s16 = sshll.u32 %s1494_s13, 5 }
   0xf   : > { %s165_s17 = scalar_lea.vmem %s1489_s0, %s1226_s14 }
  0x10   : > { %v1337_v1 = vld [vmem:[%s165_s17] sm:$0xff] }
  0x11   : > { %573 = vrot.lane.b32.xlu1 %v1337_v1, %s1292_s18  ;;  %177 = vrot.lane.b32.xlu0 %v1337_v1, %s1293_s19  ;;  %v175_v2 = vcombine.high %v1337_v1, %v1337_v1 }
  0x15   : > { %575 = vrot.lane.b32.xlu1 %v175_v2, %s1292_s18  ;;  %179 = vrot.lane.b32.xlu0 %v175_v2, %s1293_s19  ;;  %s170_s19 = scalar_lea.vmem %s1492_s3, %s1227_s16 }
  0x19   : > { %678 = vrot.lane.b32.xlu1 %v175_v2, %s1294_s20  ;;  %676 = vrot.lane.b32.xlu0 %v1337_v1, %s1294_s20 }
  0x1d   : > { %369 = vrot.lane.b32.xlu1 %v175_v2, %s1295_s21  ;;  %367 = vrot.lane.b32.xlu0 %v1337_v1, %s1295_s21 }
  0x21   : > { %781 = vrot.lane.b32.xlu1 %v175_v2, %s1296_s22  ;;  %779 = vrot.lane.b32.xlu0 %v1337_v1, %s1296_s22 }
  0x25   : > { %472 = vrot.lane.b32.xlu1 %v175_v2, %s1297_s23  ;;  %470 = vrot.lane.b32.xlu0 %v1337_v1, %s1297_s23 }
  0x29   : > { %884 = vrot.lane.b32.xlu1 %v175_v2, %s1298_s24  ;;  %882 = vrot.lane.b32.xlu0 %v1337_v1, %s1298_s24 }
  0x2d   : > { %987 = vrot.lane.b32.xlu1 %v175_v2, %s1299_s25  ;;  %985 = vrot.lane.b32.xlu0 %v1337_v1, %s1299_s25 }
  0x31   : > { %1092 = vperm.xlu0 %1280, %v1088_v3   ;;  %1097 = vperm.xlu1 %1281, %v1089_v4  }
  0x83   : > { %v574_v8 = vpop.permute.xlu1 %573  ;;  %v178_v9 = vpop.permute.xlu0 %177 }
  0x87   : > { %v576_v10 = vpop.permute.xlu1 %575  ;;  %v180_v11 = vpop.permute.xlu0 %179 }
  0x88   : > { %v185_v12 = vsel %vm183_vm0, %v180_v11, %v178_v9  ;;  %v1359_v13 = vsel %vm577_vm1, %v576_v10, %v574_v8  ;;  %v184_v14 = vsel %vm183_vm0, %v178_v9, %v180_v11  ;;  %v1361_v15 = vsel %vm577_vm1, %v574_v8, %v576_v10 }
  0x89   : > { %1174 = vmatprep.subr.msk.mxu1 %vm196_vm2, %v185_v12  ;;  %1196 = vmatprep.subr.msk.mxu0 %vm196_vm2, %v1359_v13 }
  0x8a   : > { %1175 = vmatpush1.msk.msra.mxu1 %vm196_vm2, %v184_v14  ;;  %1197 = vmatpush1.msk.msra.mxu0 %vm196_vm2, %v1361_v15 }
  0x8b   : > { %1198 = vmatmul.mubr.msk.f32.vlgmr.msra.gmra.mrb[0].mxu0 %vm189_vm3, %v1194_v16  ;;  %v679_v18 = vpop.permute.xlu1 %678  ;;  %1176 = vmatmul.mubr.msk.f32.vlgmr.msra.gmra.mrb[0].mxu1 %vm189_vm3, %v1172_v17  ;;  %v677_v19 = vpop.permute.xlu0 %676 }
  0x8c   : > { %v681_v20 = vsel %vm680_vm4, %v677_v19, %v679_v18  ;;  %v682_v21 = vsel %vm680_vm4, %v679_v18, %v677_v19  ;;  %1178 = vmatprep.subr.msk.mxu1 %vm196_vm2, %v175_v2  ;;  %273 = vmatprep.mubr.f32.mxu1 %v1291_v0 }
  0x8d   : > { %1202 = vmatprep.subr.msk.mxu0 %vm196_vm2, %v682_v21  ;;  %1179 = vmatpush1.msk.msra.mxu1 %vm196_vm2, %v1337_v1 }
  0x8e   : > { %1203 = vmatpush1.msk.msra.mxu0 %vm196_vm2, %v681_v20  ;;  %762 = vmatprep.mubr.f32.mxu0 %v1291_v0 }
  0x8f   : > { %v370_v23 = vpop.permute.xlu1 %369  ;;  %1177 = vmatmul.mubr.msk.f32.gmra.mrb[2].mxu1 %vm189_vm3, %v1173_v22  ;;  %v368_v24 = vpop.permute.xlu0 %367 }
  0x90   : > { %v373_v25 = vsel %vm371_vm5, %v370_v23, %v368_v24  ;;  %354 = vmatprep.mubr.f32.mxu1 %v1291_v0  ;;  %v372_v28 = vsel %vm371_vm5, %v368_v24, %v370_v23 }
  0x91   : > { %1184 = vmatprep.subr.msk.mxu1 %vm196_vm2, %v373_v25 }
  0x93   : > { %v782_v29 = vpop.permute.xlu1 %781  ;;  %1180 = vmatmul.mubr.msk.f32.vlgmr.msra.gmra.mrb[0].mxu1 %vm189_vm3, %v172_v26  ;;  %1204 = vmatmul.mubr.msk.f32.vlgmr.msra.gmra.mrb[0].mxu0 %vm189_vm3, %v1200_v27  ;;  %v780_v30 = vpop.permute.xlu0 %779 }
  0x94   : > { %1185 = vmatpush1.msk.msra.mxu1 %vm196_vm2, %v372_v28  ;;  %v784_v31 = vsel %vm783_vm6, %v780_v30, %v782_v29  ;;  %v785_v32 = vsel %vm783_vm6, %v782_v29, %v780_v30  ;;  %360 = vmatprep.mubr.f32.mxu1 %v1291_v0 }
  0x95   : > { %1208 = vmatprep.subr.msk.mxu0 %vm196_vm2, %v785_v32  ;;  %768 = vmatprep.mubr.f32.mxu0 %v1291_v0 }
  0x96   : > { %1209 = vmatpush1.msk.msra.mxu0 %vm196_vm2, %v784_v31 }
  0x97   : > { %v473_v35 = vpop.permute.xlu1 %472  ;;  %1181 = vmatmul.mubr.msk.f32.gmra.mrb[2].mxu1 %vm189_vm3, %v173_v33  ;;  %1205 = vmatmul.mubr.msk.f32.gmra.mrb[2].mxu0 %vm189_vm3, %v1201_v34  ;;  %v471_v36 = vpop.permute.xlu0 %470 }
  0x98   : > { %v476_v37 = vsel %vm474_vm7, %v473_v35, %v471_v36  ;;  %453 = vmatprep.mubr.f32.mxu1 %v1291_v0  ;;  %865 = vmatprep.mubr.f32.mxu0 %v1291_v0  ;;  %v475_v40 = vsel %vm474_vm7, %v471_v36, %v473_v35 }
  0x99   : > { %1190 = vmatprep.subr.msk.mxu1 %vm196_vm2, %v476_v37 }
  0x9b   : > { %v885_v41 = vpop.permute.xlu1 %884  ;;  %1186 = vmatmul.mubr.msk.f32.vlgmr.msra.gmra.mrb[0].mxu1 %vm189_vm3, %v1182_v38  ;;  %1210 = vmatmul.mubr.msk.f32.vlgmr.msra.gmra.mrb[0].mxu0 %vm189_vm3, %v1206_v39  ;;  %v883_v42 = vpop.permute.xlu0 %882 }
  0x9c   : > { %1191 = vmatpush1.msk.msra.mxu1 %vm196_vm2, %v475_v40  ;;  %v887_v43 = vsel %vm886_vm8, %v883_v42, %v885_v41  ;;  %v888_v44 = vsel %vm886_vm8, %v885_v41, %v883_v42  ;;  %459 = vmatprep.mubr.f32.mxu1 %v1291_v0 }
  0x9d   : > { %1228 = vmatprep.subr.msk.mxu1 %vm196_vm2, %v1359_v13  ;;  %1214 = vmatprep.subr.msk.mxu0 %vm196_vm2, %v888_v44 }
  0x9e   : > { %871 = vmatprep.mubr.f32.mxu0 %v1291_v0  ;;  %1215 = vmatpush1.msk.msra.mxu0 %vm196_vm2, %v887_v43 }
  0x9f   : > { %1187 = vmatmul.mubr.msk.f32.gmra.mrb[2].mxu1 %vm189_vm3, %v1183_v45  ;;  %1211 = vmatmul.mubr.msk.f32.gmra.mrb[2].mxu0 %vm189_vm3, %v1207_v46  ;;  %v988_v47 = vpop.permute.xlu1 %987  ;;  %v986_v48 = vpop.permute.xlu0 %985 }
  0xa0   : > { %556 = vmatprep.mubr.f32.mxu1 %v1291_v0  ;;  %968 = vmatprep.mubr.f32.mxu0 %v1291_v0  ;;  %v991_v49 = vsel %vm989_vm9, %v988_v47, %v986_v48  ;;  %v990_v52 = vsel %vm989_vm9, %v986_v48, %v988_v47 }
  0xa1   : > { %1220 = vmatprep.subr.msk.mxu0 %vm196_vm2, %v991_v49 }
  0xa3   : > { %1192 = vmatmul.mubr.msk.f32.vlgmr.msra.gmra.mrb[0].mxu1 %vm189_vm3, %v1188_v50  ;;  %1216 = vmatmul.mubr.msk.f32.vlgmr.msra.gmra.mrb[0].mxu0 %vm189_vm3, %v1212_v51 }
  0xa4   : > { %1229 = vmatpush1.msk.msra.mxu1 %vm196_vm2, %v1361_v15  ;;  %1221 = vmatpush1.msk.msra.mxu0 %vm196_vm2, %v990_v52 }
  0xa5   : > { %562 = vmatprep.mubr.f32.mxu1 %v1291_v0  ;;  %974 = vmatprep.mubr.f32.mxu0 %v1291_v0 }
  0xa7   : > { %1193 = vmatmul.mubr.msk.f32.gmra.mrb[2].mxu1 %vm189_vm3, %v1189_v53  ;;  %1217 = vmatmul.mubr.msk.f32.gmra.mrb[2].mxu0 %vm189_vm3, %v1213_v54 }
  0xa8   : > { %1071 = vmatprep.mubr.f32.mxu0 %v1291_v0  ;;  %665 = vmatprep.mubr.f32.mxu1 %v1291_v0 }
  0xab   : > { %1222 = vmatmul.mubr.msk.f32.vlgmr.msra.gmra.mrb[0].mxu0 %vm189_vm3, %v1218_v55 }
  0xac   : > { %1077 = vmatprep.mubr.f32.mxu0 %v1291_v0 }
  0xaf   : > { %1199 = vmatmul.mubr.msk.f32.vlgmr.msra.gmra.mrb[2].mxu1 %vm189_vm3, %v1195_v56  ;;  %1223 = vmatmul.mubr.msk.f32.gmra.mrb[2].mxu0 %vm189_vm3, %v1219_v57 }
  0xb0   : > { %v1093_v61 = vpop.permute.xlu0 %1092  ;;  %v1098_v2 = vpop.permute.xlu1 %1097 }
 0x176   : > { %v558_v58 = vpop.f32.mrb[0].mxu1 }
 0x177   : > { %v560_v59 = vpop.f32.mrb[1].mxu1 }
 0x17e   : > { %v1073_v60 = vpop.f32.mrb[0].mxu0 }
 0x17f   : > { %v1230_v62 = vadd.f32 %v1073_v60, %v558_v58  ;;  %v1075_v63 = vpop.f32.mrb[1].mxu0 }
 0x180   : > { %v1231_v0 = vadd.f32 %v1075_v63, %v560_v59 }
 0x181   : > { %v1100_v1 = vadd.f32 %v1230_v62, %v1093_v61 }
 0x182   : > { %v1101_v3 = vadd.f32 %v1231_v0, %v1093_v61  ;;  %v667_v4 = vpop.f32.mrb[2].mxu1  ;;  %v1079_v5 = vpop.f32.mrb[2].mxu0 }
 0x183   : > { %1104 = vst [vmem:[%s170_s19] sm:$0xff] %v1100_v1  ;;  %v1232_v6 = vadd.f32 %v1079_v5, %v667_v4  ;;  %v669_v7 = vpop.f32.mrb[3].mxu1  ;;  %v1081_v8 = vpop.f32.mrb[3].mxu0 }
 0x184   : > { %1105 = vst [vmem:[%s170_s19 + $0x8] sm:$0xff] %v1101_v3  ;;  %v1233_v9 = vadd.f32 %v1081_v8, %v669_v7 }
 0x185   : > { %v1102_v10 = vadd.f32 %v1232_v6, %v1098_v2 }
 0x186   : > { %v1103_v11 = vadd.f32 %v1233_v9, %v1098_v2 }
 0x187   : > { %1106 = vst [vmem:[%s170_s19 + $0x10] sm:$0xff] %v1102_v10 }
 0x188   : > { %1107 = vst [vmem:[%s170_s19 + $0x18] sm:$0xff] %v1103_v11 }
 0x189 PF: > { %s13_s12 = sadd.s32 1, %s1289_s12  }
 0x18a   : > { %p10_p4 = scmp.ge.s32.totalorder %s13_s12, 4  }
 0x18c   :  { %12 = sbr.rel (!%p10_p4) target bundleno = 1 (0x1), region = 70 }

</bundles_post_ra>
